<compile_context>
chip_gen: v7x
topology: tpu7x:2x2x1
jax: 0.10.0
libtpu: 0.0.40
codegen_flags: <defaults>
</compile_context>

<pallas_src>
import functools

import jax
import jax.numpy as jnp
from jax import lax
from jax.experimental import pallas as pl
from jax.experimental.pallas import tpu as pltpu

EPS_BN = 1e-5


# ----------------------------------------------------------------------------
# Kernel A: fc1 (1x1 conv with folded BN) + cosine gram on the L2-normalized
#           fc1 features (drives kNN selection).  For normalized features,
#           top_k(gram) == top_k(-squared_distance).
# Grid: (B,)
# ----------------------------------------------------------------------------
def _fc1_gram_kernel(x_ref, w_ref, b_ref, y_ref, g_ref):
    x = x_ref[0].astype(jnp.bfloat16)                      # (N, C)
    y = jnp.dot(x, w_ref[...],
                preferred_element_type=jnp.float32) + b_ref[...]   # BN folded
    y_ref[0] = y                                           # (N, C) f32

    inv_n = lax.rsqrt(jnp.sum(y * y, axis=-1, keepdims=True) + 1e-12)
    xn = (y * inv_n).astype(jnp.bfloat16)                  # (N, C) bf16
    # Gram kept f32: avoids top_k tie-break drift at tiny N.
    g_ref[0] = lax.dot_general(xn, xn, (((1,), (1,)), ((), ())),
                               preferred_element_type=jnp.float32)  # (N, N)


# ----------------------------------------------------------------------------
# Kernel B: Max-Relative aggregation (k-way running max over gathered
#           neighbour rows) + BasicConv (1x1 conv on interleaved [x, agg]
#           channels + ReLU) + fc2 (1x1 conv, BN folded) + residual add.
# Grid: (B,)
# ----------------------------------------------------------------------------
def _graphconv_fc2_kernel(y_ref, nbr_ref, x0_ref,
                          wbx_ref, wba_ref, bb_ref,
                          w2_ref, b2_ref, o_ref):
    y = y_ref[0]                                           # (N, C) f32

    # agg[i,c] = max_{j in N(i)} (y[j,c] - y[i,c]) = (max_j y[j,c]) - y[i,c].
    # nbr_ref block is (1, k, N, C) bf16; unrolled elementwise max over the k
    # axis in f32 (pure VPU work, no (N,N,C) intermediate, no mask/sentinel).
    kk = nbr_ref.shape[1]
    nbr_max = nbr_ref[0, 0].astype(jnp.float32)            # (N, C)
    for j in range(1, kk):
        nbr_max = jnp.maximum(nbr_max, nbr_ref[0, j].astype(jnp.float32))
    agg = nbr_max - y                                      # >= 0 (self edge)

    # BasicConv: MRConv2d interleaves channels [x_0, agg_0, x_1, agg_1, ...];
    # the interleave is folded into the pre-split bf16 weights wbx / wba.
    y16 = y.astype(jnp.bfloat16)
    a16 = agg.astype(jnp.bfloat16)
    z = (jnp.dot(y16, wbx_ref[...], preferred_element_type=jnp.float32)
         + jnp.dot(a16, wba_ref[...], preferred_element_type=jnp.float32)
         + bb_ref[...])
    z = jnp.maximum(z, 0.0)                                # ReLU, (N, 2C)

    # fc2 (BN folded into w2/b2) + residual
    o = jnp.dot(z.astype(jnp.bfloat16), w2_ref[...],
                preferred_element_type=jnp.float32) + b2_ref[...]
    o_ref[0] = o + x0_ref[0]


# ----------------------------------------------------------------------------
# Parameters (deterministic synthetic init).
# ----------------------------------------------------------------------------
def init_params(key, C):
    C2 = 2 * C
    ks = jax.random.split(key, 14)

    def nrm(k, shape, scale=0.1):
        return scale * jax.random.normal(k, shape, dtype=jnp.float32)

    p = {}
    # fc1: Conv2d(C, C, 1, bias=True) + BatchNorm2d(C)
    p['w_fc1'] = nrm(ks[0], (C, C))                   # stored as (in, out)
    p['b_fc1'] = nrm(ks[1], (C,))
    p['bn1_gamma'] = 1.0 + nrm(ks[2], (C,))
    p['bn1_beta'] = nrm(ks[3], (C,))
    p['bn1_mean'] = nrm(ks[4], (C,))
    p['bn1_var'] = 1.0 + 0.1 * jnp.abs(jax.random.normal(ks[5], (C,), jnp.float32))
    # MRConv2d.nn = BasicConv([2C, 2C]): Conv2d(2C, 2C, 1, bias=True) + ReLU
    p['w_basic'] = nrm(ks[6], (C2, C2))               # PyTorch layout (out, in)
    p['b_basic'] = nrm(ks[7], (C2,))
    # fc2: Conv2d(2C, C, 1, bias=True) + BatchNorm2d(C)
    p['w_fc2'] = nrm(ks[8], (C, C2))                  # PyTorch layout (out, in)
    p['b_fc2'] = nrm(ks[9], (C,))
    p['bn2_gamma'] = 1.0 + nrm(ks[10], (C,))
    p['bn2_beta'] = nrm(ks[11], (C,))
    p['bn2_mean'] = nrm(ks[12], (C,))
    p['bn2_var'] = 1.0 + 0.1 * jnp.abs(jax.random.normal(ks[13], (C,), jnp.float32))
    return p


# ----------------------------------------------------------------------------
# Wrapper (glue: layout changes, BN folding, top_k, neighbour gather).
# ----------------------------------------------------------------------------
def grapher_forward(x_nchw, params, k=9):
    B, C, H, W = x_nchw.shape
    N = H * W
    C2 = 2 * C
    x = jnp.transpose(x_nchw, (0, 2, 3, 1)).reshape(B, N, C).astype(jnp.float32)

    # Fold BatchNorms (inference mode) straight into the conv weights/biases.
    s1 = params['bn1_gamma'] / jnp.sqrt(params['bn1_var'] + EPS_BN)
    h1 = params['bn1_beta'] - params['bn1_mean'] * s1
    s2 = params['bn2_gamma'] / jnp.sqrt(params['bn2_var'] + EPS_BN)
    h2 = params['bn2_beta'] - params['bn2_mean'] * s2

    w1 = params['w_fc1'] * s1[None, :]                     # (C, C), scaled per out ch
    b1 = params['b_fc1'] * s1 + h1                         # (C,)
    # Split BasicConv weight so the MRConv channel interleave [x0,agg0,x1,...]
    # becomes two plain matmuls inside the kernel.
    w_basic = params['w_basic']                            # (2C, 2C) = (out, in)
    wbx = jnp.transpose(w_basic[:, 0::2])                  # (C, 2C)
    wba = jnp.transpose(w_basic[:, 1::2])                  # (C, 2C)
    bb = params['b_basic']                                 # (2C,)
    w2 = jnp.transpose(params['w_fc2']) * s2[None, :]      # (2C, C), scaled
    b2 = params['b_fc2'] * s2 + h2                         # (C,)

    to16 = lambda a: a.astype(jnp.bfloat16)
    row = lambda v: v.reshape(1, -1).astype(jnp.float32)

    # ---- Kernel A: fc1 + cosine gram, fused per batch (single HBM pass) ----
    y1, gram = pl.pallas_call(
        _fc1_gram_kernel,
        out_shape=(jax.ShapeDtypeStruct((B, N, C), jnp.float32),
                   jax.ShapeDtypeStruct((B, N, N), jnp.float32)),
        grid_spec=pltpu.PrefetchScalarGridSpec(
            num_scalar_prefetch=0, grid=(B,),
            in_specs=[pl.BlockSpec((1, N, C), lambda b: (b, 0, 0)),
                      pl.BlockSpec((C, C), lambda b: (0, 0)),
                      pl.BlockSpec((1, C), lambda b: (0, 0))],
            out_specs=[pl.BlockSpec((1, N, C), lambda b: (b, 0, 0)),
                       pl.BlockSpec((1, N, N), lambda b: (b, 0, 0))]),
        compiler_params=pltpu.CompilerParams(dimension_semantics=("parallel",)),
    )(x, to16(w1), row(b1))

    # ---- kNN graph + neighbour row gather (XLA glue, bf16 to halve traffic) ----
    kk = min(int(k), N)
    _, idx = lax.top_k(gram, kk)                           # (B, N, kk); self included
    y1_16 = y1.astype(jnp.bfloat16)
    y_nbr = jax.vmap(lambda yb, ib: yb[ib])(y1_16, idx)    # (B, N, kk, C) bf16
    y_nbr = jnp.transpose(y_nbr, (0, 2, 1, 3))             # (B, kk, N, C) bf16

    # ---- Kernel B: max-relative agg + BasicConv + fc2 + residual ----
    out = pl.pallas_call(
        _graphconv_fc2_kernel,
        out_shape=jax.ShapeDtypeStruct((B, N, C), jnp.float32),
        grid_spec=pltpu.PrefetchScalarGridSpec(
            num_scalar_prefetch=0, grid=(B,),
            in_specs=[pl.BlockSpec((1, N, C), lambda b: (b, 0, 0)),
                      pl.BlockSpec((1, kk, N, C), lambda b: (b, 0, 0, 0)),
                      pl.BlockSpec((1, N, C), lambda b: (b, 0, 0)),
                      pl.BlockSpec((C, C2), lambda b: (0, 0)),
                      pl.BlockSpec((C, C2), lambda b: (0, 0)),
                      pl.BlockSpec((1, C2), lambda b: (0, 0)),
                      pl.BlockSpec((C2, C), lambda b: (0, 0)),
                      pl.BlockSpec((1, C), lambda b: (0, 0))],
            out_specs=pl.BlockSpec((1, N, C), lambda b: (b, 0, 0))),
        compiler_params=pltpu.CompilerParams(dimension_semantics=("parallel",)),
    )(y1, y_nbr, x, to16(wbx), to16(wba), row(bb), to16(w2), row(b2))

    return jnp.transpose(out.reshape(B, H, W, C), (0, 3, 1, 2))   # back to NCHW


if __name__ == "__main__":
    key = jax.random.PRNGKey(0)
    kx, kp = jax.random.split(key)

    B, C, H, W = 2, 32, 8, 8          # small shapes; N = H*W = 64 nodes
    x = jax.random.normal(kx, (B, C, H, W), dtype=jnp.float32)
    params = init_params(kp, C)

    fwd = jax.jit(functools.partial(grapher_forward, k=9))
    out = fwd(x, params)
    jax.block_until_ready(out)
    assert out.shape == (B, C, H, W) and out.dtype == jnp.float32
    print("KERNEL_OK")
</pallas_src>

<mosaic_0001>
module attributes {stable_mosaic.version = 11 : i64} {
  func.func @_fc1_gram_kernel(%arg0: i32, %arg1: memref<1x64x32xf32, #tpu.memory_space<vmem>>, %arg2: memref<32x32xbf16, #tpu.memory_space<vmem>>, %arg3: memref<1x32xf32, #tpu.memory_space<vmem>>, %arg4: memref<1x64x32xf32, #tpu.memory_space<vmem>>, %arg5: memref<1x64x64xf32, #tpu.memory_space<vmem>>) attributes {dimension_semantics = [#tpu.dimension_semantics<parallel>], iteration_bounds = array<i64: 2>, scalar_prefetch = 0 : i64, scratch_operands = 0 : i64, tpu.core_type = #tpu.core_type<tc>, window_params = [{transform_indices = @transform_0, window_bounds = array<i64: 1, 64, 32>}, {pipeline_mode = #tpu.pipeline_mode<synchronous>, transform_indices = @transform_1, window_bounds = array<i64: 32, 32>}, {pipeline_mode = #tpu.pipeline_mode<synchronous>, transform_indices = @transform_2, window_bounds = array<i64: 1, 32>}, {transform_indices = @transform_3, window_bounds = array<i64: 1, 64, 32>}, {transform_indices = @transform_4, window_bounds = array<i64: 1, 64, 64>}]} {
    %c0 = arith.constant 0 : index
    %c0_0 = arith.constant 0 : index
    %c0_1 = arith.constant 0 : index
    %0 = vector.load %arg1[%c0, %c0_0, %c0_1] : memref<1x64x32xf32, #tpu.memory_space<vmem>>, vector<1x64x32xf32>
    %1 = vector.shape_cast %0 : vector<1x64x32xf32> to vector<64x32xf32>
    %2 = arith.truncf %1 : vector<64x32xf32> to vector<64x32xbf16>
    %c0_2 = arith.constant 0 : index
    %c0_3 = arith.constant 0 : index
    %3 = vector.load %arg2[%c0_2, %c0_3] : memref<32x32xbf16, #tpu.memory_space<vmem>>, vector<32x32xbf16>
    %cst = arith.constant dense<0.000000e+00> : vector<64x32xf32>
    %4 = tpu.matmul %2, %3, %cst {dimension_numbers = #tpu.dot_dimension_numbers<[1], [0], [0], [1], [0, 0, 1, 1], [], []>} : vector<64x32xbf16>, vector<32x32xbf16>, vector<64x32xf32> -> vector<64x32xf32>
    %c0_4 = arith.constant 0 : index
    %c0_5 = arith.constant 0 : index
    %5 = vector.load %arg3[%c0_4, %c0_5] : memref<1x32xf32, #tpu.memory_space<vmem>>, vector<1x32xf32>
    %6 = vector.broadcast %5 : vector<1x32xf32> to vector<64x32xf32>
    %7 = arith.addf %4, %6 : vector<64x32xf32>
    %c0_6 = arith.constant 0 : index
    %c0_7 = arith.constant 0 : index
    %c0_8 = arith.constant 0 : index
    %8 = vector.load %arg4[%c0_6, %c0_7, %c0_8] : memref<1x64x32xf32, #tpu.memory_space<vmem>>, vector<1x64x32xf32>
    %9 = vector.shape_cast %8 : vector<1x64x32xf32> to vector<64x32xf32>
    %10 = vector.shape_cast %7 : vector<64x32xf32> to vector<1x64x32xf32>
    tpu.vector_store %arg4[%c0_6, %c0_7, %c0_8], %10 {strides = array<i32>} : memref<1x64x32xf32, #tpu.memory_space<vmem>>, vector<1x64x32xf32>,
    %11 = arith.mulf %7, %7 : vector<64x32xf32>
    %cst_9 = arith.constant dense<0.000000e+00> : vector<64xf32>
    %12 = vector.multi_reduction <add>, %11, %cst_9 [1] : vector<64x32xf32> to vector<64xf32>
    %13 = vector.shape_cast %12 : vector<64xf32> to vector<64x1xf32>
    %cst_10 = arith.constant 9.99999996E-13 : f32
    %14 = vector.broadcast %cst_10 : f32 to vector<64x1xf32>
    %15 = arith.addf %13, %14 : vector<64x1xf32>
    %16 = math.rsqrt %15 : vector<64x1xf32>
    %17 = vector.broadcast %16 : vector<64x1xf32> to vector<64x32xf32>
    %18 = arith.mulf %7, %17 : vector<64x32xf32>
    %19 = arith.truncf %18 : vector<64x32xf32> to vector<64x32xbf16>
    %cst_11 = arith.constant dense<0.000000e+00> : vector<64x64xf32>
    %20 = tpu.matmul %19, %19, %cst_11 {dimension_numbers = #tpu.dot_dimension_numbers<[1], [1], [0], [0], [0, 0, 1, 0], [], []>} : vector<64x32xbf16>, vector<64x32xbf16>, vector<64x64xf32> -> vector<64x64xf32>
    %c0_12 = arith.constant 0 : index
    %c0_13 = arith.constant 0 : index
    %c0_14 = arith.constant 0 : index
    %21 = vector.load %arg5[%c0_12, %c0_13, %c0_14] : memref<1x64x64xf32, #tpu.memory_space<vmem>>, vector<1x64x64xf32>
    %22 = vector.shape_cast %21 : vector<1x64x64xf32> to vector<64x64xf32>
    %23 = vector.shape_cast %20 : vector<64x64xf32> to vector<1x64x64xf32>
    tpu.vector_store %arg5[%c0_12, %c0_13, %c0_14], %23 {strides = array<i32>} : memref<1x64x64xf32, #tpu.memory_space<vmem>>, vector<1x64x64xf32>,
    return
  }
  func.func @transform_0(%arg0: i32) -> (i32, i32, i32) {
    %c0_i32 = arith.constant 0 : i32
    %c0_i32_0 = arith.constant 0 : i32
    %c0_i32_1 = arith.constant 0 : i32
    return %arg0, %c0_i32, %c0_i32_0 : i32, i32, i32
  }
  func.func @transform_1(%arg0: i32) -> (i32, i32) {
    %c0_i32 = arith.constant 0 : i32
    %c0_i32_0 = arith.constant 0 : i32
    %c0_i32_1 = arith.constant 0 : i32
    return %c0_i32, %c0_i32_0 : i32, i32
  }
  func.func @transform_2(%arg0: i32) -> (i32, i32) {
    %c0_i32 = arith.constant 0 : i32
    %c0_i32_0 = arith.constant 0 : i32
    %c0_i32_1 = arith.constant 0 : i32
    return %c0_i32, %c0_i32_0 : i32, i32
  }
  func.func @transform_3(%arg0: i32) -> (i32, i32, i32) {
    %c0_i32 = arith.constant 0 : i32
    %c0_i32_0 = arith.constant 0 : i32
    %c0_i32_1 = arith.constant 0 : i32
    return %arg0, %c0_i32, %c0_i32_0 : i32, i32, i32
  }
  func.func @transform_4(%arg0: i32) -> (i32, i32, i32) {
    %c0_i32 = arith.constant 0 : i32
    %c0_i32_0 = arith.constant 0 : i32
    %c0_i32_1 = arith.constant 0 : i32
    return %arg0, %c0_i32, %c0_i32_0 : i32, i32, i32
  }
}

module attributes {stable_mosaic.version = 11 : i64} {
  func.func @_graphconv_fc2_kernel(%arg0: i32, %arg1: memref<1x64x32xf32, #tpu.memory_space<vmem>>, %arg2: memref<1x9x64x32xbf16, #tpu.memory_space<vmem>>, %arg3: memref<1x64x32xf32, #tpu.memory_space<vmem>>, %arg4: memref<32x64xbf16, #tpu.memory_space<vmem>>, %arg5: memref<32x64xbf16, #tpu.memory_space<vmem>>, %arg6: memref<1x64xf32, #tpu.memory_space<vmem>>, %arg7: memref<64x32xbf16, #tpu.memory_space<vmem>>, %arg8: memref<1x32xf32, #tpu.memory_space<vmem>>, %arg9: memref<1x64x32xf32, #tpu.memory_space<vmem>>) attributes {dimension_semantics = [#tpu.dimension_semantics<parallel>], iteration_bounds = array<i64: 2>, scalar_prefetch = 0 : i64, scratch_operands = 0 : i64, tpu.core_type = #tpu.core_type<tc>, window_params = [{transform_indices = @transform_0, window_bounds = array<i64: 1, 64, 32>}, {transform_indices = @transform_1, window_bounds = array<i64: 1, 9, 64, 32>}, {transform_indices = @transform_2, window_bounds = array<i64: 1, 64, 32>}, {pipeline_mode = #tpu.pipeline_mode<synchronous>, transform_indices = @transform_3, window_bounds = array<i64: 32, 64>}, {pipeline_mode = #tpu.pipeline_mode<synchronous>, transform_indices = @transform_4, window_bounds = array<i64: 32, 64>}, {pipeline_mode = #tpu.pipeline_mode<synchronous>, transform_indices = @transform_5, window_bounds = array<i64: 1, 64>}, {pipeline_mode = #tpu.pipeline_mode<synchronous>, transform_indices = @transform_6, window_bounds = array<i64: 64, 32>}, {pipeline_mode = #tpu.pipeline_mode<synchronous>, transform_indices = @transform_7, window_bounds = array<i64: 1, 32>}, {transform_indices = @transform_8, window_bounds = array<i64: 1, 64, 32>}]} {
    %c0 = arith.constant 0 : index
    %c0_0 = arith.constant 0 : index
    %c0_1 = arith.constant 0 : index
    %0 = vector.load %arg1[%c0, %c0_0, %c0_1] : memref<1x64x32xf32, #tpu.memory_space<vmem>>, vector<1x64x32xf32>
    %1 = vector.shape_cast %0 : vector<1x64x32xf32> to vector<64x32xf32>
    %c0_2 = arith.constant 0 : index
    %c0_3 = arith.constant 0 : index
    %c0_4 = arith.constant 0 : index
    %c0_5 = arith.constant 0 : index
    %2 = vector.load %arg2[%c0_2, %c0_3, %c0_4, %c0_5] : memref<1x9x64x32xbf16, #tpu.memory_space<vmem>>, vector<1x1x64x32xbf16>
    %3 = vector.shape_cast %2 : vector<1x1x64x32xbf16> to vector<64x32xbf16>
    %4 = arith.extf %3 : vector<64x32xbf16> to vector<64x32xf32>
    %c0_6 = arith.constant 0 : index
    %c1 = arith.constant 1 : index
    %c0_7 = arith.constant 0 : index
    %c0_8 = arith.constant 0 : index
    %5 = vector.load %arg2[%c0_6, %c1, %c0_7, %c0_8] : memref<1x9x64x32xbf16, #tpu.memory_space<vmem>>, vector<1x1x64x32xbf16>
    %6 = vector.shape_cast %5 : vector<1x1x64x32xbf16> to vector<64x32xbf16>
    %7 = arith.extf %6 : vector<64x32xbf16> to vector<64x32xf32>
    %8 = arith.maximumf %4, %7 : vector<64x32xf32>
    %c0_9 = arith.constant 0 : index
    %c2 = arith.constant 2 : index
    %c0_10 = arith.constant 0 : index
    %c0_11 = arith.constant 0 : index
    %9 = vector.load %arg2[%c0_9, %c2, %c0_10, %c0_11] : memref<1x9x64x32xbf16, #tpu.memory_space<vmem>>, vector<1x1x64x32xbf16>
    %10 = vector.shape_cast %9 : vector<1x1x64x32xbf16> to vector<64x32xbf16>
    %11 = arith.extf %10 : vector<64x32xbf16> to vector<64x32xf32>
    %12 = arith.maximumf %8, %11 : vector<64x32xf32>
    %c0_12 = arith.constant 0 : index
    %c3 = arith.constant 3 : index
    %c0_13 = arith.constant 0 : index
    %c0_14 = arith.constant 0 : index
    %13 = vector.load %arg2[%c0_12, %c3, %c0_13, %c0_14] : memref<1x9x64x32xbf16, #tpu.memory_space<vmem>>, vector<1x1x64x32xbf16>
    %14 = vector.shape_cast %13 : vector<1x1x64x32xbf16> to vector<64x32xbf16>
    %15 = arith.extf %14 : vector<64x32xbf16> to vector<64x32xf32>
    %16 = arith.maximumf %12, %15 : vector<64x32xf32>
    %c0_15 = arith.constant 0 : index
    %c4 = arith.constant 4 : index
    %c0_16 = arith.constant 0 : index
    %c0_17 = arith.constant 0 : index
    %17 = vector.load %arg2[%c0_15, %c4, %c0_16, %c0_17] : memref<1x9x64x32xbf16, #tpu.memory_space<vmem>>, vector<1x1x64x32xbf16>
    %18 = vector.shape_cast %17 : vector<1x1x64x32xbf16> to vector<64x32xbf16>
    %19 = arith.extf %18 : vector<64x32xbf16> to vector<64x32xf32>
    %20 = arith.maximumf %16, %19 : vector<64x32xf32>
    %c0_18 = arith.constant 0 : index
    %c5 = arith.constant 5 : index
    %c0_19 = arith.constant 0 : index
    %c0_20 = arith.constant 0 : index
    %21 = vector.load %arg2[%c0_18, %c5, %c0_19, %c0_20] : memref<1x9x64x32xbf16, #tpu.memory_space<vmem>>, vector<1x1x64x32xbf16>
    %22 = vector.shape_cast %21 : vector<1x1x64x32xbf16> to vector<64x32xbf16>
    %23 = arith.extf %22 : vector<64x32xbf16> to vector<64x32xf32>
    %24 = arith.maximumf %20, %23 : vector<64x32xf32>
    %c0_21 = arith.constant 0 : index
    %c6 = arith.constant 6 : index
    %c0_22 = arith.constant 0 : index
    %c0_23 = arith.constant 0 : index
    %25 = vector.load %arg2[%c0_21, %c6, %c0_22, %c0_23] : memref<1x9x64x32xbf16, #tpu.memory_space<vmem>>, vector<1x1x64x32xbf16>
    %26 = vector.shape_cast %25 : vector<1x1x64x32xbf16> to vector<64x32xbf16>
    %27 = arith.extf %26 : vector<64x32xbf16> to vector<64x32xf32>
    %28 = arith.maximumf %24, %27 : vector<64x32xf32>
    %c0_24 = arith.constant 0 : index
    %c7 = arith.constant 7 : index
    %c0_25 = arith.constant 0 : index
    %c0_26 = arith.constant 0 : index
    %29 = vector.load %arg2[%c0_24, %c7, %c0_25, %c0_26] : memref<1x9x64x32xbf16, #tpu.memory_space<vmem>>, vector<1x1x64x32xbf16>
    %30 = vector.shape_cast %29 : vector<1x1x64x32xbf16> to vector<64x32xbf16>
    %31 = arith.extf %30 : vector<64x32xbf16> to vector<64x32xf32>
    %32 = arith.maximumf %28, %31 : vector<64x32xf32>
    %c0_27 = arith.constant 0 : index
    %c8 = arith.constant 8 : index
    %c0_28 = arith.constant 0 : index
    %c0_29 = arith.constant 0 : index
    %33 = vector.load %arg2[%c0_27, %c8, %c0_28, %c0_29] : memref<1x9x64x32xbf16, #tpu.memory_space<vmem>>, vector<1x1x64x32xbf16>
    %34 = vector.shape_cast %33 : vector<1x1x64x32xbf16> to vector<64x32xbf16>
    %35 = arith.extf %34 : vector<64x32xbf16> to vector<64x32xf32>
    %36 = arith.maximumf %32, %35 : vector<64x32xf32>
    %37 = arith.subf %36, %1 : vector<64x32xf32>
    %38 = arith.truncf %1 : vector<64x32xf32> to vector<64x32xbf16>
    %39 = arith.truncf %37 : vector<64x32xf32> to vector<64x32xbf16>
    %c0_30 = arith.constant 0 : index
    %c0_31 = arith.constant 0 : index
    %40 = vector.load %arg4[%c0_30, %c0_31] : memref<32x64xbf16, #tpu.memory_space<vmem>>, vector<32x64xbf16>
    %cst = arith.constant dense<0.000000e+00> : vector<64x64xf32>
    %41 = tpu.matmul %38, %40, %cst {dimension_numbers = #tpu.dot_dimension_numbers<[1], [0], [0], [1], [0, 0, 1, 1], [], []>} : vector<64x32xbf16>, vector<32x64xbf16>, vector<64x64xf32> -> vector<64x64xf32>
    %c0_32 = arith.constant 0 : index
    %c0_33 = arith.constant 0 : index
    %42 = vector.load %arg5[%c0_32, %c0_33] : memref<32x64xbf16, #tpu.memory_space<vmem>>, vector<32x64xbf16>
    %cst_34 = arith.constant dense<0.000000e+00> : vector<64x64xf32>
    %43 = tpu.matmul %39, %42, %cst_34 {dimension_numbers = #tpu.dot_dimension_numbers<[1], [0], [0], [1], [0, 0, 1, 1], [], []>} : vector<64x32xbf16>, vector<32x64xbf16>, vector<64x64xf32> -> vector<64x64xf32>
    %44 = arith.addf %41, %43 : vector<64x64xf32>
    %c0_35 = arith.constant 0 : index
    %c0_36 = arith.constant 0 : index
    %45 = vector.load %arg6[%c0_35, %c0_36] : memref<1x64xf32, #tpu.memory_space<vmem>>, vector<1x64xf32>
    %46 = vector.broadcast %45 : vector<1x64xf32> to vector<64x64xf32>
    %47 = arith.addf %44, %46 : vector<64x64xf32>
    %cst_37 = arith.constant 0.000000e+00 : f32
    %48 = vector.broadcast %cst_37 : f32 to vector<64x64xf32>
    %49 = arith.maximumf %47, %48 : vector<64x64xf32>
    %50 = arith.truncf %49 : vector<64x64xf32> to vector<64x64xbf16>
    %c0_38 = arith.constant 0 : index
    %c0_39 = arith.constant 0 : index
    %51 = vector.load %arg7[%c0_38, %c0_39] : memref<64x32xbf16, #tpu.memory_space<vmem>>, vector<64x32xbf16>
    %cst_40 = arith.constant dense<0.000000e+00> : vector<64x32xf32>
    %52 = tpu.matmul %50, %51, %cst_40 {dimension_numbers = #tpu.dot_dimension_numbers<[1], [0], [0], [1], [0, 0, 1, 1], [], []>} : vector<64x64xbf16>, vector<64x32xbf16>, vector<64x32xf32> -> vector<64x32xf32>
    %c0_41 = arith.constant 0 : index
    %c0_42 = arith.constant 0 : index
    %53 = vector.load %arg8[%c0_41, %c0_42] : memref<1x32xf32, #tpu.memory_space<vmem>>, vector<1x32xf32>
    %54 = vector.broadcast %53 : vector<1x32xf32> to vector<64x32xf32>
    %55 = arith.addf %52, %54 : vector<64x32xf32>
    %c0_43 = arith.constant 0 : index
    %c0_44 = arith.constant 0 : index
    %c0_45 = arith.constant 0 : index
    %56 = vector.load %arg3[%c0_43, %c0_44, %c0_45] : memref<1x64x32xf32, #tpu.memory_space<vmem>>, vector<1x64x32xf32>
    %57 = vector.shape_cast %56 : vector<1x64x32xf32> to vector<64x32xf32>
    %58 = arith.addf %55, %57 : vector<64x32xf32>
    %c0_46 = arith.constant 0 : index
    %c0_47 = arith.constant 0 : index
    %c0_48 = arith.constant 0 : index
    %59 = vector.load %arg9[%c0_46, %c0_47, %c0_48] : memref<1x64x32xf32, #tpu.memory_space<vmem>>, vector<1x64x32xf32>
    %60 = vector.shape_cast %59 : vector<1x64x32xf32> to vector<64x32xf32>
    %61 = vector.shape_cast %58 : vector<64x32xf32> to vector<1x64x32xf32>
    tpu.vector_store %arg9[%c0_46, %c0_47, %c0_48], %61 {strides = array<i32>} : memref<1x64x32xf32, #tpu.memory_space<vmem>>, vector<1x64x32xf32>,
    return
  }
  func.func @transform_0(%arg0: i32) -> (i32, i32, i32) {
    %c0_i32 = arith.constant 0 : i32
    %c0_i32_0 = arith.constant 0 : i32
    %c0_i32_1 = arith.constant 0 : i32
    return %arg0, %c0_i32, %c0_i32_0 : i32, i32, i32
  }
  func.func @transform_1(%arg0: i32) -> (i32, i32, i32, i32) {
    %c0_i32 = arith.constant 0 : i32
    %c0_i32_0 = arith.constant 0 : i32
    %c0_i32_1 = arith.constant 0 : i32
    %c0_i32_2 = arith.constant 0 : i32
    return %arg0, %c0_i32, %c0_i32_0, %c0_i32_1 : i32, i32, i32, i32
  }
  func.func @transform_2(%arg0: i32) -> (i32, i32, i32) {
    %c0_i32 = arith.constant 0 : i32
    %c0_i32_0 = arith.constant 0 : i32
    %c0_i32_1 = arith.constant 0 : i32
    return %arg0, %c0_i32, %c0_i32_0 : i32, i32, i32
  }
  func.func @transform_3(%arg0: i32) -> (i32, i32) {
    %c0_i32 = arith.constant 0 : i32
    %c0_i32_0 = arith.constant 0 : i32
    %c0_i32_1 = arith.constant 0 : i32
    return %c0_i32, %c0_i32_0 : i32, i32
  }
  func.func @transform_4(%arg0: i32) -> (i32, i32) {
    %c0_i32 = arith.constant 0 : i32
    %c0_i32_0 = arith.constant 0 : i32
    %c0_i32_1 = arith.constant 0 : i32
    return %c0_i32, %c0_i32_0 : i32, i32
  }
  func.func @transform_5(%arg0: i32) -> (i32, i32) {
    %c0_i32 = arith.constant 0 : i32
    %c0_i32_0 = arith.constant 0 : i32
    %c0_i32_1 = arith.constant 0 : i32
    return %c0_i32, %c0_i32_0 : i32, i32
  }
  func.func @transform_6(%arg0: i32) -> (i32, i32) {
    %c0_i32 = arith.constant 0 : i32
    %c0_i32_0 = arith.constant 0 : i32
    %c0_i32_1 = arith.constant 0 : i32
    return %c0_i32, %c0_i32_0 : i32, i32
  }
  func.func @transform_7(%arg0: i32) -> (i32, i32) {
    %c0_i32 = arith.constant 0 : i32
    %c0_i32_0 = arith.constant 0 : i32
    %c0_i32_1 = arith.constant 0 : i32
    return %c0_i32, %c0_i32_0 : i32, i32
  }
  func.func @transform_8(%arg0: i32) -> (i32, i32, i32) {
    %c0_i32 = arith.constant 0 : i32
    %c0_i32_0 = arith.constant 0 : i32
    %c0_i32_1 = arith.constant 0 : i32
    return %arg0, %c0_i32, %c0_i32_0 : i32, i32, i32
  }
}

</mosaic_0001>

<bundles_post_ra>
// kernel: grapher_forward.2
= control target key start
LH: loop header
LB: loop body
LE: loop exit
PB: predicated region body
PF: predicated region fallthrough
CT: control target
= control target key end

     0   :  { %10 = vsyncpa [#allocation3], 0  ;;  %s1045_s0 = inlined_call_operand.hbm [shape: f32[2,64,32], index: 0, kind: input, shape index: {}]   ;;  %s1046_s1 = inlined_call_operand.vmem [shape: bf16[32,32], index: 1, kind: input, shape index: {}]   ;;  %s1047_s2 = inlined_call_operand.vmem [shape: f32[1,32], index: 2, kind: input, shape index: {}]   ;;  %s1048_s3 = inlined_call_operand.vmem [shape: f32[2,64,32], index: 3, kind: output, shape index: {0}]   ;;  %s1049_s4 = inlined_call_operand.vmem [shape: f32[2,64,64], index: 4, kind: output, shape index: {1}]  }
   0x1   :  { %12 = vsyncpa [#allocation3 + $0x1], 0  ;;  %s826_s15 = smov 0   ;;  %s828_s16 = smov 0  }
   0x2   :  { %s830_s17 = smov 0   ;;  %s832_s18 = smov 0  }
   0x3 LB: > { %s845_s19 = sadd.s32 4294967295, %s796_s18   ;;  %s848_s20 = sadd.s32 1, %s796_s18   ;;  %s796_s18 = sphi %s832_s18, %s1056_s18   ;;  %s792_s17 = sphi %s830_s17, %s1055_s17   ;;  %s788_s16 = sphi %s828_s16, %s1054_s16   ;;  %s784_s15 = sphi %s826_s15, %s1053_s15  }
   0x4   : > { %s22_s21 = ssub.s32 %s796_s18, %s848_s20  ;;  %s25_s22 = sadd.s32 1, %s792_s17 }
   0x5   : > { %p23_p0 = scmp.eq.s32.totalorder %s22_s21, 0  ;;  %p32_p1 = scmp.ne.s32.totalorder %s792_s17, %s788_s16 }
   0x6   : > { %p33_p2 = scmp.eq.s32.totalorder %s796_s18, 0  ;;  %p38_p3 = scmp.ne.s32.totalorder %s788_s16, %s784_s15 }
   0x7   : > { %s858_s23 = scalar_select %p23_p0, %s792_s17, %s25_s22  }
   0x8   : > { %p34_p4 = por %p33_p2, %p32_p1  ;;  %p39_p5 = scmp.eq.s32.totalorder %s845_s19, 0 }
   0x9   : > { %p679_p6 = scmp.lt.s32.totalorder %s796_s18, 2  ;;  %s162_s25 = sand.u32 1, %s792_s17  }
   0xa   : > { %p862_p7 = por %p39_p5, %p38_p3  ;;  %s602_s26 = sshll.u32 %s162_s25, 6 }
   0xb   : > { %s624_s27 = sshll.u32 %s796_s18, 10  ;;  %s166_s5 = scalar_lea.vmem [#allocation2], %s602_s26 }
   0xc   : > { %s871_s30 = scalar_lea.hbm %s1045_s0, %s624_s27  ;;  %s173_s6 = sshll.u32 %s166_s5, 4  ;;  %s873_s6 = int_to_ptr.vmem [resolvable:$true] %s173_s6 }
   0xd   : > { %p875_p8 = pnand %p679_p6, %p34_p4  ;;  %s880_s8 = scalar_lea.sflag [#allocation3], %s162_s25 }
   0xe   : > { %s732_s9 = scalar_lea.hbm %s871_s30, 1024  ;;  %s737_s12 = scalar_lea.hbm %s1045_s0, 2048 }
   0xf   : > { %p733_p10 = scmp.ne.s32.totalorder %s871_s30, %s732_s9  ;;  %p734_p11 = pneg %p875_p8 }
  0x10   : > { %p738_p0 = scmp.lt.u32.totalorder %s871_s30, %s1045_s0  ;;  %p739_p1 = scmp.lt.u32.totalorder %s737_s12, %s732_s9 }
  0x11   : > { %p735_p12 = pnand %p734_p11, %p733_p10  ;;  %p741_p3 = scmp.lt.u32.totalorder %s732_s9, %s871_s30 }
  0x12   : > { %p740_p2 = por %p739_p1, %p738_p0 }
  0x13   : > { %p736_p13 = pneg %p735_p12 }
  0x14   : > { %p742_p4 = por %p741_p3, %p740_p2 }
  0x16   : > { %p743_p5 = pnand %p742_p4, %p736_p13 }
  0x18   : > { %746 = shalt.err (!%p743_p5)
}
  0x19   : > { %s747_s15 = scalar_lea.vmem %s873_s6, 1024  ;;  %s798_s21 = smov [#allocation2]  }
  0x1a   : > { %p748_p6 = scmp.ne.s32.totalorder %s873_s6, %s747_s15  ;;  %s752_s22 = sshll.u32 %s798_s21, 4  ;;  %s753_s22 = int_to_ptr.vmem [resolvable:$false] %s752_s22 }
  0x1b   : > { %s754_s25 = scalar_lea.vmem %s753_s22, 2048  ;;  %p755_p9 = scmp.lt.s32.totalorder %s873_s6, %s753_s22 }
  0x1c   : > { %p750_p10 = pnand %p748_p6, %p734_p11  ;;  %p756_p0 = scmp.lt.s32.totalorder %s754_s25, %s747_s15 }
  0x1e   : > { %p751_p12 = pneg %p750_p10  ;;  %p757_p1 = por %p756_p0, %p755_p9 }
  0x20   : > { %p758_p2 = pnand %p757_p1, %p751_p12 }
  0x22   : > { %761 = shalt.err (!%p758_p2)
}
  0x23   : > { %s799_s26 = smov 128   ;;  %s800_s27 = smov 8  }
  0x24   : > { %678 = dma.hbm_to_vmem [thread:$0]  (!%p875_p8), %s871_s30, 1024, %s873_s6, %s880_s8, %s799_s26, %s799_s26, %s800_s27  }
  0x25   : > { %p181_p11 = scmp.lt.s32.totalorder %s796_s18, 3  ;;  %p1052_p13 = scmp.ge.s32.totalorder %s796_s18, 1 }
  0x27   : > { %p182_p3 = pnand %p1052_p13, %p181_p11 }
  0x28   : > { %s187_s28 = sand.u32 (!%p182_p3), 1, %s788_s16  }
  0x29   : > { %185 = sbr.rel (%p182_p3) target bundleno = 695 (0x2b7), region = 32  ;;  %s606_s29 = sshll.u32 (!%p182_p3), %s187_s28, 6 }
  0x2a   : > { %s188_s5 = scalar_lea.sflag (!%p182_p3), [#allocation3], %s187_s28  ;;  %s191_s9 = scalar_lea.vmem (!%p182_p3), [#allocation2], %s606_s29 }
  0x30   : > { %779 = dma.done.wait (%p862_p7), %s188_s5, 1024  }
  0x31   : > { %781 = vsyncadd (%p862_p7), %s188_s5, 4294966272  ;;  %v714_v0 = vld [vmem:[%s1046_s1] sm:$0xff]   ;;  %v715_v1 = vld [vmem:[%s1046_s1 + $0x8] sm:$0xff]   ;;  %vm267_vm0 = vcmask 261120   ;;  %p221_p7 = scmp.lt.s32.totalorder %s845_s19, 1  ;;  %vm490_vm1 = vcmask 523264  }
  0x32   : > { %641 = vmatprep.subr.bf16.mxu0 %v714_v0  ;;  %v232_v2 = vld [vmem:[%s191_s9] sm:$0xff]  ;;  %v233_v3 = vld [vmem:[%s191_s9 + $0x8] sm:$0xff]  ;;  %v234_v5 = vld [vmem:[%s191_s9 + $0x10] sm:$0xff] }
  0x33   : > { %642 = vmatpush3.bf16.msra.mxu0 %v714_v0  ;;  %v240_v4 = vpack.c.bf16 %v233_v3, %v232_v2  ;;  %v235_v6 = vld [vmem:[%s191_s9 + $0x18] sm:$0xff]  ;;  %v236_v7 = vld [vmem:[%s191_s9 + $0x20] sm:$0xff]  ;;  %v237_v8 = vld [vmem:[%s191_s9 + $0x28] sm:$0xff]  ;;  %s1058_s19 = smov (!%p221_p7, %s845_s19), 1 }
  0x34   : > { %643 = vmatprep.subr.bf16.mxu0 %v715_v1  ;;  %v241_v9 = vpack.c.bf16 %v235_v6, %v234_v5  ;;  %v242_v10 = vpack.c.bf16 %v237_v8, %v236_v7  ;;  %v238_v11 = vld [vmem:[%s191_s9 + $0x30] sm:$0xff]  ;;  %v239_v12 = vld [vmem:[%s191_s9 + $0x38] sm:$0xff]  ;;  %s625_s18 = sshll.u32 %s1058_s19, 6  ;;  %v611_v14 = vld [vmem:[%s1047_s2] ss:$0 sm:$0xff] }
  0x35   : > { %645 = vmatprep.mubr.msk.bf16.mxu0 %vm267_vm0, %v240_v4  ;;  %v243_v13 = vpack.c.bf16 %v239_v12, %v238_v11  ;;  %s939_s13 = scalar_lea.vmem %s1048_s3, %s625_s18  ;;  %s230_s21 = scalar_lea.vmem %s1049_s4, %s625_s18 }
  0x37   : > { %644 = vmatpush3.bf16.msra.mxu0 %v715_v1 }
  0x3a   : > { %646 = vmatmul.mubr.msk.bf16.vlgmr.msra.gmra.mrb[0].mxu0 %vm267_vm0, %v241_v9 }
  0x3b   : > { %649 = vmatprep.mubr.msk.bf16.mxu0 %vm267_vm0, %v242_v10 }
  0x42   : > { %650 = vmatmul.mubr.msk.bf16.gmra.mrb[4].mxu0 %vm267_vm0, %v243_v13 }
 0x10d   : > { %v647_v15 = vpop.f32.mrb[0].mxu0 }
 0x10e   : > { %v941_v16 = vadd.f32 %v647_v15, %v611_v14  ;;  %v314_v17 = vpop.f32.mrb[1].mxu0 }
 0x10f   : > { %v943_v18 = vadd.f32 %v611_v14, %v314_v17  ;;  %v648_v19 = vpop.f32.mrb[2].mxu0 }
 0x110   : > { %347 = vst.msk [vmem:[%s939_s13 + $0x10] sm:$0xff] %vm267_vm0, %v941_v16  ;;  %v948_v20 = vadd.f32 %v648_v19, %v611_v14  ;;  %v317_v21 = vpop.f32.mrb[3].mxu0  ;;  %v355_v22 = vmul.f32 %v941_v16, %v941_v16 }
 0x111   : > { %345 = vst.msk [vmem:[%s939_s13] sm:$0xff] %vm267_vm0, %v943_v18  ;;  %v955_v23 = vadd.f32 %v611_v14, %v317_v21  ;;  %v353_v24 = vmul.f32 %v943_v18, %v943_v18 }
 0x112   : > { %348 = vst.msk [vmem:[%s939_s13 + $0x18] sm:$0xff] %vm267_vm0, %v948_v20  ;;  %v367_v25 = vsel %vm267_vm0, %v355_v22, 0.0  ;;  %v356_v26 = vmul.f32 %v948_v20, %v948_v20 }
 0x113   : > { %346 = vst.msk [vmem:[%s939_s13 + $0x8] sm:$0xff] %vm267_vm0, %v955_v23  ;;  %368 = vadd.xlane.f32.xlu1 %v367_v25  ;;  %v361_v27 = vsel %vm267_vm0, %v353_v24, 0.0  ;;  %v354_v28 = vmul.f32 %v955_v23, %v955_v23 }
 0x114   : > { %362 = vadd.xlane.f32.xlu0 %v361_v27  ;;  %v370_v32 = vsel %vm267_vm0, %v356_v26, 0.0 }
 0x115   : > { %v651_v29 = vpop.f32.mrb[4].mxu0  ;;  %v364_v35 = vsel %vm267_vm0, %v354_v28, 0.0 }
 0x116   : > { %v971_v30 = vadd.f32 %v651_v29, %v611_v14  ;;  %v330_v31 = vpop.f32.mrb[5].mxu0 }
 0x117   : > { %v974_v33 = vadd.f32 %v611_v14, %v330_v31  ;;  %371 = vadd.xlane.f32.xlu1 %v370_v32  ;;  %v652_v34 = vpop.f32.mrb[6].mxu0 }
 0x118   : > { %351 = vst.msk [vmem:[%s939_s13 + $0x30] sm:$0xff] %vm267_vm0, %v971_v30  ;;  %v980_v36 = vadd.f32 %v652_v34, %v611_v14  ;;  %v333_v37 = vpop.f32.mrb[7].mxu0  ;;  %365 = vadd.xlane.f32.xlu0 %v364_v35  ;;  %v359_v40 = vmul.f32 %v971_v30, %v971_v30 }
 0x119   : > { %349 = vst.msk [vmem:[%s939_s13 + $0x20] sm:$0xff] %vm267_vm0, %v974_v33  ;;  %v334_v38 = vadd.f32 %v611_v14, %v333_v37  ;;  %v357_v39 = vmul.f32 %v974_v33, %v974_v33 }
 0x11a   : > { %352 = vst.msk [vmem:[%s939_s13 + $0x38] sm:$0xff] %vm267_vm0, %v980_v36  ;;  %v360_v43 = vmul.f32 %v980_v36, %v980_v36  ;;  %v379_v45 = vsel %vm267_vm0, %v359_v40, 0.0 }
 0x11b   : > { %350 = vst.msk [vmem:[%s939_s13 + $0x28] sm:$0xff] %vm267_vm0, %v334_v38  ;;  %v373_v41 = vsel %vm267_vm0, %v357_v39, 0.0  ;;  %v358_v42 = vmul.f32 %v334_v38, %v334_v38 }
 0x11c   : > { %374 = vadd.xlane.f32.xlu0 %v373_v41  ;;  %v382_v46 = vsel %vm267_vm0, %v360_v43, 0.0 }
 0x11d   : > { %v376_v44 = vsel %vm267_vm0, %v358_v42, 0.0 }
 0x11e   : > { %377 = vadd.xlane.f32.xlu1 %v376_v44 }
 0x120   : > { %380 = vadd.xlane.f32.xlu0 %v379_v45 }
 0x122   : > { %383 = vadd.xlane.f32.xlu1 %v382_v46 }
 0x1a0   : > { %v369_v47 = vpop.xlane.xlu1 %368 }
 0x1a1   : > { %v387_v48 = vadd.f32 1e-12, %v369_v47  ;;  %v363_v49 = vpop.xlane.xlu0 %362 }
 0x1a2   : > { %v385_v50 = vadd.f32 1e-12, %v363_v49 }
 0x1a3   : > { %716 = vrsqrt.f32 %v387_v48 }
 0x1a4   : > { %v372_v51 = vpop.xlane.xlu1 %371  ;;  %718 = vrsqrt.f32 %v385_v50 }
 0x1a5   : > { %v388_v52 = vadd.f32 1e-12, %v372_v51  ;;  %v366_v53 = vpop.xlane.xlu0 %365 }
 0x1a6   : > { %v386_v54 = vadd.f32 1e-12, %v366_v53 }
 0x1a7   : > { %720 = vrsqrt.f32 %v388_v52 }
 0x1a8   : > { %722 = vrsqrt.f32 %v386_v54 }
 0x1a9   : > { %v375_v55 = vpop.xlane.xlu0 %374 }
 0x1aa   : > { %v389_v57 = vadd.f32 1e-12, %v375_v55 }
 0x1ab   : > { %v378_v56 = vpop.xlane.xlu1 %377 }
 0x1ac   : > { %v390_v58 = vadd.f32 1e-12, %v378_v56 }
 0x1ad   : > { %v717_v59 = vpop.eup %716  ;;  %v381_v63 = vpop.xlane.xlu0 %380 }
 0x1ae   : > { %724 = vrsqrt.f32 %v390_v58  ;;  %v719_v61 = vpop.eup %718  ;;  %v391_v5 = vadd.f32 1e-12, %v381_v63  ;;  %v403_v7 = vmul.f32 %v717_v59, %v941_v16 }
 0x1af   : > { %v384_v60 = vpop.xlane.xlu1 %383  ;;  %726 = vrsqrt.f32 %v389_v57  ;;  %v401_v2 = vmul.f32 %v719_v61, %v943_v18 }
 0x1b0   : > { %v392_v1 = vadd.f32 1e-12, %v384_v60 }
 0x1b1   : > { %v721_v62 = vpop.eup %720 }
 0x1b2   : > { %v723_v0 = vpop.eup %722  ;;  %v404_v4 = vmul.f32 %v721_v62, %v948_v20  ;;  %728 = vrsqrt.f32 %v392_v1 }
 0x1b3   : > { %v402_v3 = vmul.f32 %v723_v0, %v955_v23  ;;  %730 = vrsqrt.f32 %v391_v5 }
 0x1b4   : > { %v410_v9 = vpack.c.bf16 %v404_v4, %v403_v7 }
 0x1b5   : > { %v409_v6 = vpack.c.bf16 %v402_v3, %v401_v2 }
 0x1b6   : > { %v417_v14 = vsel %vm267_vm0, %v410_v9, 0 }
 0x1b7   : > { %669 = vmatprep.subr.msk.bf16.mxu1 %vm267_vm0, %v409_v6  ;;  %661 = vmatprep.mubr.msk.bf16.mxu1 %vm267_vm0, %v409_v6  ;;  %v414_v8 = vsel %vm267_vm0, %v409_v6, 0 }
 0x1b8   : > { %v725_v10 = vpop.eup %724  ;;  %654 = vmatpush3.bf16.xpose.msra.mxu1 %v414_v8 }
 0x1b9   : > { %670 = vmatprep.subr.msk.bf16.mxu1 %vm267_vm0, %v410_v9  ;;  %v727_v11 = vpop.eup %726  ;;  %v406_v12 = vmul.f32 %v725_v10, %v334_v38 }
 0x1ba   : > { %v405_v13 = vmul.f32 %v727_v11, %v974_v33 }
 0x1bc   : > { %v411_v15 = vpack.c.bf16 %v406_v12, %v405_v13  ;;  %v729_v16 = vpop.eup %728 }
 0x1bd   : > { %v731_v17 = vpop.eup %730  ;;  %v408_v18 = vmul.f32 %v729_v16, %v980_v36 }
 0x1be   : > { %v407_v19 = vmul.f32 %v731_v17, %v971_v30  ;;  %v420_v20 = vsel %vm267_vm0, %v411_v15, 0 }
 0x1c0   : > { %656 = vmatpush3.bf16.xpose.msra.mxu1 %v417_v14  ;;  %v412_v21 = vpack.c.bf16 %v408_v18, %v407_v19 }
 0x1c1   : > { %671 = vmatprep.subr.msk.bf16.mxu1 %vm267_vm0, %v411_v15 }
 0x1c2   : > { %v423_v22 = vsel %vm267_vm0, %v412_v21, 0 }
 0x1c8   : > { %658 = vmatpush3.bf16.xpose.msra.mxu1 %v420_v20 }
 0x1c9   : > { %672 = vmatprep.subr.msk.bf16.mxu1 %vm267_vm0, %v412_v21 }
 0x1d0   : > { %660 = vmatpush3.bf16.xpose.msra.mxu1 %v423_v22 }
 0x1d7   : > { %662 = vmatmul.mubr.msk.bf16.vlgmr.msra.gmra.mrb[0].mxu1 %vm267_vm0, %v410_v9 }
 0x1d8   : > { %665 = vmatprep.mubr.msk.bf16.mxu1 %vm267_vm0, %v411_v15 }
 0x1df   : > { %666 = vmatmul.mubr.msk.bf16.gmra.mrb[4].mxu1 %vm267_vm0, %v412_v21 }
 0x2aa   : > { %v663_v23 = vpop.f32.mrb[0].mxu1 }
 0x2ab   : > { %493 = vst.msk [vmem:[%s230_s21 + $0x10] sm:$0xff] %vm490_vm1, %v663_v23  ;;  %v459_v24 = vpop.f32.mrb[1].mxu1 }
 0x2ac   : > { %491 = vst.msk [vmem:[%s230_s21] sm:$0xff] %vm490_vm1, %v459_v24  ;;  %v664_v25 = vpop.f32.mrb[2].mxu1 }
 0x2ad   : > { %494 = vst.msk [vmem:[%s230_s21 + $0x18] sm:$0xff] %vm490_vm1, %v664_v25  ;;  %v462_v26 = vpop.f32.mrb[3].mxu1 }
 0x2ae   : > { %492 = vst.msk [vmem:[%s230_s21 + $0x8] sm:$0xff] %vm490_vm1, %v462_v26 }
 0x2b2   : > { %v667_v27 = vpop.f32.mrb[4].mxu1 }
 0x2b3   : > { %497 = vst.msk [vmem:[%s230_s21 + $0x30] sm:$0xff] %vm490_vm1, %v667_v27  ;;  %v475_v28 = vpop.f32.mrb[5].mxu1 }
 0x2b4   : > { %495 = vst.msk [vmem:[%s230_s21 + $0x20] sm:$0xff] %vm490_vm1, %v475_v28  ;;  %v668_v29 = vpop.f32.mrb[6].mxu1 }
 0x2b5   : > { %498 = vst.msk [vmem:[%s230_s21 + $0x38] sm:$0xff] %vm490_vm1, %v668_v29  ;;  %v478_v30 = vpop.f32.mrb[7].mxu1 }
 0x2b6   : > { %496 = vst.msk [vmem:[%s230_s21 + $0x28] sm:$0xff] %vm490_vm1, %v478_v30 }
 0x2b7 PF: > { %p15_p8 = scmp.ge.s32.totalorder %s848_s20, 4   ;;  %s1053_s15 = smov %s788_s16 }
 0x2b8   : > { %s1054_s16 = smov %s792_s17  ;;  %s1055_s17 = smov %s858_s23 }
 0x2b9   : > { %s1056_s18 = smov %s848_s20  ;;  %17 = sbr.rel (!%p15_p8) target bundleno = 3 (0x3), region = 84 }
 0x2c0   :  { %536 = vsyncpa [#allocation3], 1 }
 0x2c1   :  { %538 = vsyncpa [#allocation3 + $0x1], 1 }

// kernel: grapher_forward.3
= control target key start
LH: loop header
LB: loop body
LE: loop exit
PB: predicated region body
PF: predicated region fallthrough
CT: control target
= control target key end

     0   :  { %13 = vsyncpa [#allocation3], 0  ;;  %s1818_s0 = inlined_call_operand.vmem [shape: f32[2,64,32], index: 0, kind: input, shape index: {}]   ;;  %s1819_s1 = inlined_call_operand.vmem [shape: bf16[2,9,64,32], index: 1, kind: input, shape index: {}]   ;;  %s1820_s2 = inlined_call_operand.vmem [shape: f32[2,64,32], index: 2, kind: input, shape index: {}]   ;;  %s1821_s3 = inlined_call_operand.vmem [shape: bf16[32,64], index: 3, kind: input, shape index: {}]   ;;  %s1822_s4 = inlined_call_operand.vmem [shape: bf16[32,64], index: 4, kind: input, shape index: {}]   ;;  %s1823_s5 = inlined_call_operand.vmem [shape: f32[1,64], index: 5, kind: input, shape index: {}]   ;;  %s1824_s6 = inlined_call_operand.vmem [shape: bf16[64,32], index: 6, kind: input, shape index: {}]   ;;  %s1825_s7 = inlined_call_operand.vmem [shape: f32[1,32], index: 7, kind: input, shape index: {}]   ;;  %s1826_s8 = inlined_call_operand.hbm [shape: f32[2,64,32], index: 8, kind: output, shape index: {}]  }
   0x1   :  { %15 = vsyncpa [#allocation3 + $0x1], 0  ;;  %s1553_s27 = smov 0   ;;  %s1555_s28 = smov 0  }
   0x2   :  { %s1557_s29 = smov 0   ;;  %s1559_s30 = smov 0  }
   0x3 LB: > { %s1574_s9 = sadd.s32 4294967295, %s1503_s30   ;;  %s1040_s10 = sadd.s32 4294967294, %s1503_s30   ;;  %s1503_s30 = sphi %s1559_s30, %s1832_s30   ;;  %s1499_s29 = sphi %s1557_s29, %s1831_s29   ;;  %s1495_s28 = sphi %s1555_s28, %s1830_s28   ;;  %s1491_s27 = sphi %s1553_s27, %s1829_s27  }
   0x4   : > { %s1578_s11 = sadd.s32 1, %s1503_s30   ;;  %s211_s12 = sadd.s32 1, %s1499_s29 }
   0x5   : > { %s208_s13 = ssub.s32 %s1503_s30, %s1578_s11  ;;  %p221_p0 = scmp.ne.s32.totalorder %s1499_s29, %s1495_s28 }
   0x6   : > { %p209_p1 = scmp.eq.s32.totalorder %s208_s13, 0  ;;  %p222_p2 = scmp.eq.s32.totalorder %s1574_s9, 1 }
   0x7   : > { %p227_p3 = scmp.ne.s32.totalorder %s1495_s28, %s1491_s27  ;;  %p228_p4 = scmp.eq.s32.totalorder %s1040_s10, 1 }
   0x8   : > { %s1589_s14 = scalar_select %p209_p1, %s1499_s29, %s211_s12  }
   0x9   : > { %p1591_p5 = por %p222_p2, %p221_p0  ;;  %p1595_p6 = por %p228_p4, %p227_p3 }
   0xa   : > { %p1043_p7 = scmp.ge.s32.totalorder %s1503_s30, 1  ;;  %p285_p8 = scmp.lt.s32.totalorder %s1503_s30, 3 }
   0xc   : > { %p286_p9 = pnand %p1043_p7, %p285_p8 }
   0xd   : > { %v1433_v0 = vld [vmem:[%s1822_s4] sm:$0xff] (!%p286_p9)   ;;  %p329_p10 = scmp.lt.s32.totalorder (!%p286_p9), %s1574_s9, 1  ;;  %v1434_v1 = vld [vmem:[%s1822_s4 + $0x8] sm:$0xff] (!%p286_p9)   ;;  %vm605_vm0 = vcmask (!%p286_p9), 261120   ;;  %vm838_vm1 = vcmask (!%p286_p9), 523264   ;;  %s1505_s23 = smov (!%p286_p9), [#allocation2]  }
   0xe   : > { %289 = sbr.rel (%p286_p9) target bundleno = 546 (0x222), region = 52  ;;  %1343 = vmatprep.subr.bf16.mxu0 (!%p286_p9), %v1433_v0  ;;  %v1615_v2 = vld [vmem:[%s1821_s3] sm:$0xff] (!%p286_p9)  }
   0xf   : > { %1344 = vmatpush3.bf16.msra.mxu0 (!%p286_p9), %v1433_v0  ;;  %v1437_v3 = vld [vmem:[%s1824_s6] sm:$0xff] (!%p286_p9)  }
  0x10   : > { %1345 = vmatprep.subr.bf16.mxu0 (!%p286_p9), %v1434_v1  ;;  %1367 = vmatprep.subr.bf16.mxu1 (!%p286_p9), %v1437_v3 }
  0x11   : > { %1368 = vmatpush3.bf16.msra.mxu1 (!%p286_p9), %v1437_v3 }
  0x13   : > { %1346 = vmatpush3.bf16.msra.mxu0 (!%p286_p9), %v1434_v1 }
  0x14   : > { %1355 = vmatprep.subr.bf16.mxu0 (!%p286_p9), %v1615_v2 }
  0x15   : > { %s1609_s21 = scalar_select %p329_p10, %s1574_s9, 1 }
  0x17   : > { %s1391_s22 = smul.u32 288, %s1609_s21  ;;  %s1141_s17 = sshll.u32 %s1609_s21, 6 }
  0x18   : > { %s1664_s20 = scalar_lea.vmem %s1818_s0, %s1141_s17  ;;  %s1744_s24 = scalar_lea.vmem %s1820_s2, %s1141_s17 }
  0x19   : > { %s1623_s13 = scalar_lea.vmem %s1819_s1, %s1391_s22  ;;  %s1143_s17 = sshll.u32 %s1574_s9, 10 }
  0x1a   : > { %v1145_v4 = vld [vmem:[%s1623_s13] sm:$0xff]   ;;  %v1288_v24 = vld [vmem:[%s1623_s13 + $0x8] sm:$0xff]   ;;  %v1289_v1 = vld [vmem:[%s1623_s13 + $0x10] sm:$0xff]   ;;  %s1768_s19 = scalar_lea.hbm %s1826_s8, %s1143_s17 }
  0x1b   : > { %v1291_v5 = vld [vmem:[%s1623_s13 + $0x20] sm:$0xff]   ;;  %v1146_v7 = vunpack.c.l.bf16 %v1145_v4  ;;  %v1147_v8 = vunpack.c.h.bf16 %v1145_v4  ;;  %v1292_v29 = vld [vmem:[%s1623_s13 + $0x28] sm:$0xff]   ;;  %v1150_v38 = vunpack.c.l.bf16 %v1288_v24  ;;  %v1151_v39 = vunpack.c.h.bf16 %v1288_v24 }
  0x1c   : > { %v1295_v6 = vld [vmem:[%s1623_s13 + $0x40] sm:$0xff]   ;;  %v1162_v9 = vunpack.c.l.bf16 %v1291_v5  ;;  %v1163_v10 = vunpack.c.h.bf16 %v1291_v5  ;;  %v1296_v34 = vld [vmem:[%s1623_s13 + $0x48] sm:$0xff]   ;;  %v1166_v42 = vunpack.c.l.bf16 %v1292_v29  ;;  %v1167_v43 = vunpack.c.h.bf16 %v1292_v29 }
  0x1d   : > { %v1299_v11 = vld [vmem:[%s1623_s13 + $0x60] sm:$0xff]   ;;  %v1178_v14 = vunpack.c.l.bf16 %v1295_v6  ;;  %v1179_v15 = vunpack.c.h.bf16 %v1295_v6  ;;  %v1300_v35 = vld [vmem:[%s1623_s13 + $0x68] sm:$0xff]   ;;  %v1182_v46 = vunpack.c.l.bf16 %v1296_v34  ;;  %v1183_v47 = vunpack.c.h.bf16 %v1296_v34 }
  0x1e   : > { %v1303_v12 = vld [vmem:[%s1623_s13 + $0x80] sm:$0xff]   ;;  %v1194_v16 = vunpack.c.l.bf16 %v1299_v11  ;;  %v386_v19 = vmax.f32 %v1146_v7, %v1162_v9  ;;  %v387_v20 = vmax.f32 %v1147_v8, %v1163_v10  ;;  %v1195_v21 = vunpack.c.h.bf16 %v1299_v11  ;;  %v1304_v44 = vld [vmem:[%s1623_s13 + $0x88] sm:$0xff]   ;;  %v1293_v11 = vld [vmem:[%s1623_s13 + $0x30] sm:$0xff]  }
  0x1f   : > { %v1307_v13 = vld [vmem:[%s1623_s13 + $0xa0] sm:$0xff]   ;;  %v1210_v22 = vunpack.c.l.bf16 %v1303_v12  ;;  %v1211_v25 = vunpack.c.h.bf16 %v1303_v12  ;;  %v1308_v45 = vld [vmem:[%s1623_s13 + $0xa8] sm:$0xff]   ;;  %v1198_v48 = vunpack.c.l.bf16 %v1300_v35  ;;  %v1199_v49 = vunpack.c.h.bf16 %v1300_v35  ;;  %v1297_v12 = vld [vmem:[%s1623_s13 + $0x50] sm:$0xff]  }
  0x20   : > { %v1311_v17 = vld [vmem:[%s1623_s13 + $0xc0] sm:$0xff]   ;;  %v1226_v26 = vunpack.c.l.bf16 %v1307_v13  ;;  %v1227_v27 = vunpack.c.h.bf16 %v1307_v13  ;;  %v411_v30 = vmax.f32 %v386_v19, %v1178_v14  ;;  %v412_v31 = vmax.f32 %v387_v20, %v1179_v15  ;;  %v1312_v54 = vld [vmem:[%s1623_s13 + $0xc8] sm:$0xff]  }
  0x21   : > { %v1634_v18 = vld [vmem:[%s1623_s13 + $0xe0] sm:$0xff]   ;;  %v1242_v28 = vunpack.c.l.bf16 %v1311_v17  ;;  %v1243_v32 = vunpack.c.h.bf16 %v1311_v17  ;;  %v388_v52 = vmax.f32 %v1150_v38, %v1166_v42  ;;  %v389_v53 = vmax.f32 %v1151_v39, %v1167_v43  ;;  %v1650_v55 = vld [vmem:[%s1623_s13 + $0xe8] sm:$0xff]   ;;  %v1309_v43 = vld [vmem:[%s1623_s13 + $0xb0] sm:$0xff]  }
  0x22   : > { %v1637_v23 = vld [vmem:[%s1623_s13 + $0x100] sm:$0xff]   ;;  %v1258_v33 = vunpack.c.l.bf16 %v1634_v18  ;;  %v1259_v36 = vunpack.c.h.bf16 %v1634_v18  ;;  %v436_v40 = vmax.f32 %v411_v30, %v1194_v16  ;;  %v437_v41 = vmax.f32 %v412_v31, %v1195_v21  ;;  %v1655_v0 = vld [vmem:[%s1623_s13 + $0x108] sm:$0xff]  }
  0x23   : > { %v1274_v37 = vunpack.c.l.bf16 %v1637_v23  ;;  %v1275_v56 = vunpack.c.h.bf16 %v1637_v23  ;;  %v1214_v57 = vunpack.c.l.bf16 %v1304_v44  ;;  %v1215_v58 = vunpack.c.h.bf16 %v1304_v44  ;;  %v1438_v13 = vld [vmem:[%s1824_s6 + $0x8] sm:$0xff]   ;;  %v1676_v23 = vld [vmem:[%s1664_s20] sm:$0xff] }
  0x24   : > { %v461_v50 = vmax.f32 %v436_v40, %v1210_v22  ;;  %v462_v51 = vmax.f32 %v437_v41, %v1211_v25  ;;  %v1230_v59 = vunpack.c.l.bf16 %v1308_v45  ;;  %v413_v62 = vmax.f32 %v388_v52, %v1182_v46  ;;  %v1301_v22 = vld [vmem:[%s1623_s13 + $0x70] sm:$0xff]   ;;  %1369 = vmatprep.subr.bf16.mxu1 %v1438_v13  ;;  %v1679_v24 = vld [vmem:[%s1664_s20 + $0x8] sm:$0xff] }
  0x25   : > { %v414_v63 = vmax.f32 %v389_v53, %v1183_v47  ;;  %v1231_v3 = vunpack.c.h.bf16 %v1308_v45  ;;  %v1246_v4 = vunpack.c.l.bf16 %v1312_v54  ;;  %v1247_v5 = vunpack.c.h.bf16 %v1312_v54  ;;  %1370 = vmatpush3.bf16.msra.mxu1 %v1438_v13  ;;  %v1313_v47 = vld [vmem:[%s1623_s13 + $0xd0] sm:$0xff]   ;;  %v1691_v54 = vld [vmem:[%s1664_s20 + $0x18] sm:$0xff] }
  0x26   : > { %v486_v60 = vmax.f32 %v461_v50, %v1226_v26  ;;  %v487_v61 = vmax.f32 %v462_v51, %v1227_v27  ;;  %v1262_v6 = vunpack.c.l.bf16 %v1650_v55  ;;  %v438_v9 = vmax.f32 %v413_v62, %v1198_v48  ;;  %v1317_v52 = vld [vmem:[%s1623_s13 + $0xf0] sm:$0xff]  }
  0x27   : > { %v439_v10 = vmax.f32 %v414_v63, %v1199_v49  ;;  %v1263_v14 = vunpack.c.h.bf16 %v1650_v55  ;;  %v1278_v15 = vunpack.c.l.bf16 %v1655_v0  ;;  %v1279_v16 = vunpack.c.h.bf16 %v1655_v0  ;;  %v1688_v53 = vld [vmem:[%s1664_s20 + $0x10] sm:$0xff]  ;;  %v1290_v63 = vld [vmem:[%s1623_s13 + $0x18] sm:$0xff]  }
  0x28   : > { %v511_v7 = vmax.f32 %v486_v60, %v1242_v28  ;;  %v512_v8 = vmax.f32 %v487_v61, %v1243_v32  ;;  %v1154_v17 = vunpack.c.l.bf16 %v1289_v1  ;;  %v463_v20 = vmax.f32 %v438_v9, %v1214_v57 }
  0x29   : > { %v464_v21 = vmax.f32 %v439_v10, %v1215_v58  ;;  %v1155_v25 = vunpack.c.h.bf16 %v1289_v1  ;;  %v1170_v26 = vunpack.c.l.bf16 %v1293_v11  ;;  %v1171_v27 = vunpack.c.h.bf16 %v1293_v11 }
  0x2a   : > { %v536_v18 = vmax.f32 %v511_v7, %v1258_v33  ;;  %v537_v19 = vmax.f32 %v512_v8, %v1259_v36  ;;  %v1186_v28 = vunpack.c.l.bf16 %v1297_v12  ;;  %v488_v31 = vmax.f32 %v463_v20, %v1230_v59  ;;  %v1305_v33 = vld [vmem:[%s1623_s13 + $0x90] sm:$0xff]  }
  0x2b   : > { %v489_v32 = vmax.f32 %v464_v21, %v1231_v3  ;;  %v390_v34 = vmax.f32 %v1154_v17, %v1170_v26  ;;  %v391_v35 = vmax.f32 %v1155_v25, %v1171_v27  ;;  %v1187_v36 = vunpack.c.h.bf16 %v1297_v12  ;;  %v1321_v59 = vld [vmem:[%s1623_s13 + $0x110] sm:$0xff]   ;;  %v1436_v17 = vld [vmem:[%s1821_s3 + $0x8] sm:$0xff]   ;;  %v1306_v27 = vld [vmem:[%s1623_s13 + $0x98] sm:$0xff]  }
  0x2c   : > { %v561_v29 = vmax.f32 %v536_v18, %v1274_v37  ;;  %v562_v30 = vmax.f32 %v537_v19, %v1275_v56  ;;  %v1202_v38 = vunpack.c.l.bf16 %v1301_v22  ;;  %v513_v41 = vmax.f32 %v488_v31, %v1246_v4 }
  0x2d   : > { %v514_v42 = vmax.f32 %v489_v32, %v1247_v5  ;;  %v415_v37 = vmax.f32 %v390_v34, %v1186_v28  ;;  %v416_v44 = vmax.f32 %v391_v35, %v1187_v36  ;;  %v1203_v45 = vunpack.c.h.bf16 %v1301_v22  ;;  %v1294_v5 = vld [vmem:[%s1623_s13 + $0x38] sm:$0xff]   ;;  %v349_v35 = vld [vmem:[%s1664_s20 + $0x20] sm:$0xff]  ;;  %v350_v36 = vld [vmem:[%s1664_s20 + $0x28] sm:$0xff] }
  0x2e   : > { %v569_v39 = vsub.f32 %v561_v29, %v1676_v23  ;;  %v570_v40 = vsub.f32 %v562_v30, %v1679_v24  ;;  %v1218_v46 = vunpack.c.l.bf16 %v1305_v33  ;;  %v538_v49 = vmax.f32 %v513_v41, %v1262_v6  ;;  %v1298_v6 = vld [vmem:[%s1623_s13 + $0x58] sm:$0xff]  }
  0x2f   : > { %v539_v50 = vmax.f32 %v514_v42, %v1263_v14  ;;  %v1219_v51 = vunpack.c.h.bf16 %v1305_v33  ;;  %v440_v55 = vmax.f32 %v415_v37, %v1202_v38  ;;  %v441_v56 = vmax.f32 %v416_v44, %v1203_v45  ;;  %v1310_v34 = vld [vmem:[%s1623_s13 + $0xb8] sm:$0xff]  }
  0x30   : > { %v581_v48 = vpack.c.bf16 %v570_v40, %v569_v39  ;;  %v1234_v57 = vunpack.c.l.bf16 %v1309_v43  ;;  %v1235_v58 = vunpack.c.h.bf16 %v1309_v43  ;;  %v563_v60 = vmax.f32 %v538_v49, %v1278_v15  ;;  %v1302_v15 = vld [vmem:[%s1623_s13 + $0x78] sm:$0xff]  }
  0x31   : > { %v564_v61 = vmax.f32 %v539_v50, %v1279_v16  ;;  %v1250_v62 = vunpack.c.l.bf16 %v1313_v47  ;;  %v465_v0 = vmax.f32 %v440_v55, %v1218_v46  ;;  %v466_v1 = vmax.f32 %v441_v56, %v1219_v51  ;;  %v1314_v37 = vld [vmem:[%s1623_s13 + $0xd8] sm:$0xff]  }
  0x32   : > { %1347 = vmatprep.mubr.msk.bf16.mxu0 %vm605_vm0, %v581_v48  ;;  %v1251_v3 = vunpack.c.h.bf16 %v1313_v47  ;;  %v1266_v4 = vunpack.c.l.bf16 %v1317_v52  ;;  %v571_v7 = vsub.f32 %v563_v60, %v1688_v53  ;;  %v1267_v9 = vunpack.c.h.bf16 %v1317_v52  ;;  %v1318_v49 = vld [vmem:[%s1623_s13 + $0xf8] sm:$0xff]  }
  0x33   : > { %v572_v8 = vsub.f32 %v564_v61, %v1691_v54  ;;  %v1282_v10 = vunpack.c.l.bf16 %v1321_v59  ;;  %v490_v11 = vmax.f32 %v465_v0, %v1234_v57  ;;  %v491_v12 = vmax.f32 %v466_v1, %v1235_v58  ;;  %v1322_v57 = vld [vmem:[%s1623_s13 + $0x118] sm:$0xff]  }
  0x34   : > { %v1158_v13 = vunpack.c.l.bf16 %v1290_v63  ;;  %v1159_v14 = vunpack.c.h.bf16 %v1290_v63  ;;  %v1174_v18 = vunpack.c.l.bf16 %v1294_v5  ;;  %v1175_v19 = vunpack.c.h.bf16 %v1294_v5  ;;  %v351_v5 = vld [vmem:[%s1664_s20 + $0x30] sm:$0xff] }
  0x35   : > { %v582_v16 = vpack.c.bf16 %v572_v8, %v571_v7  ;;  %v1190_v20 = vunpack.c.l.bf16 %v1298_v6  ;;  %v515_v21 = vmax.f32 %v490_v11, %v1250_v62  ;;  %v516_v22 = vmax.f32 %v491_v12, %v1251_v3 }
  0x36   : > { %v1283_v25 = vunpack.c.h.bf16 %v1321_v59  ;;  %v1191_v26 = vunpack.c.h.bf16 %v1298_v6  ;;  %v392_v28 = vmax.f32 %v1158_v13, %v1174_v18  ;;  %v393_v29 = vmax.f32 %v1159_v14, %v1175_v19  ;;  %v352_v6 = vld [vmem:[%s1664_s20 + $0x38] sm:$0xff]  ;;  %s326_s20 = sand.u32 1, %s1495_s28  }
  0x37   : > { %1348 = vmatmul.mubr.msk.bf16.vlgmr.msra.gmra.mrb[0].mxu0 %vm605_vm0, %v582_v16  ;;  %v1206_v30 = vunpack.c.l.bf16 %v1302_v15  ;;  %v1207_v31 = vunpack.c.h.bf16 %v1302_v15  ;;  %v540_v32 = vmax.f32 %v515_v21, %v1266_v4  ;;  %v541_v33 = vmax.f32 %v516_v22, %v1267_v9  ;;  %s1044_s10 = sshll.u32 %s326_s20, 6  ;;  %s1777_s9 = scalar_lea.sflag [#allocation3], %s326_s20 }
  0x38   : > { %1356 = vmatpush3.bf16.msra.mxu0 %v1615_v2  ;;  %v417_v38 = vmax.f32 %v392_v28, %v1190_v20  ;;  %v418_v39 = vmax.f32 %v393_v29, %v1191_v26  ;;  %v1222_v40 = vunpack.c.l.bf16 %v1306_v27  ;;  %v1223_v41 = vunpack.c.h.bf16 %v1306_v27  ;;  %s328_s21 = scalar_lea.vmem [#allocation2], %s1044_s10 }
  0x39   : > { %1357 = vmatprep.subr.bf16.mxu0 %v1436_v17  ;;  %v565_v42 = vmax.f32 %v540_v32, %v1282_v10  ;;  %v566_v43 = vmax.f32 %v541_v33, %v1283_v25  ;;  %v1238_v46 = vunpack.c.l.bf16 %v1310_v34  ;;  %v1239_v47 = vunpack.c.h.bf16 %v1310_v34  ;;  %s954_s12 = sshll.u32 %s328_s21, 4  ;;  %s1770_s12 = int_to_ptr.vmem [resolvable:$true] %s954_s12 }
  0x3a   : > { %v442_v44 = vmax.f32 %v417_v38, %v1206_v30  ;;  %v443_v45 = vmax.f32 %v418_v39, %v1207_v31  ;;  %v1254_v52 = vunpack.c.l.bf16 %v1314_v37  ;;  %v1255_v55 = vunpack.c.h.bf16 %v1314_v37  ;;  %s1441_s22 = scalar_lea.vmem %s1770_s12, 1024 }
  0x3b   : > { %v573_v2 = vsub.f32 %v565_v42, %v349_v35  ;;  %v574_v48 = vsub.f32 %v566_v43, %v350_v36  ;;  %v1270_v60 = vunpack.c.l.bf16 %v1318_v49  ;;  %v1271_v61 = vunpack.c.h.bf16 %v1318_v49  ;;  %v916_v49 = vld [vmem:[%s1744_s24] sm:$0xff]  ;;  %p1442_p11 = scmp.ne.s32.totalorder %s1770_s12, %s1441_s22 }
  0x3c   : > { %1358 = vmatpush3.bf16.msra.mxu0 %v1436_v17  ;;  %v467_v50 = vmax.f32 %v442_v44, %v1222_v40  ;;  %v468_v51 = vmax.f32 %v443_v45, %v1223_v41  ;;  %v1286_v0 = vunpack.c.l.bf16 %v1322_v57  ;;  %v1287_v1 = vunpack.c.h.bf16 %v1322_v57  ;;  %v1127_v45 = vld [vmem:[%s1825_s7] ss:$0 sm:$0xff] }
  0x3d   : > { %v583_v56 = vpack.c.bf16 %v574_v48, %v573_v2  ;;  %v577_v11 = vpack.c.bf16 %v1679_v24, %v1676_v23  ;;  %v578_v13 = vpack.c.bf16 %v1691_v54, %v1688_v53  ;;  %v579_v14 = vpack.c.bf16 %v350_v36, %v349_v35  ;;  %v1439_v23 = vld [vmem:[%s1824_s6 + $0x10] sm:$0xff]   ;;  %v1440_v24 = vld [vmem:[%s1824_s6 + $0x18] sm:$0xff]   ;;  %v1126_v53 = vld [vmem:[%s1823_s5] ss:$0 sm:$0xff]  ;;  %p1443_p12 = pnand %p1442_p11, %p1591_p5 }
  0x3e   : > { %v492_v58 = vmax.f32 %v467_v50, %v1238_v46  ;;  %v493_v59 = vmax.f32 %v468_v51, %v1239_v47  ;;  %v580_v15 = vpack.c.bf16 %v352_v6, %v351_v5  ;;  %1371 = vmatprep.subr.bf16.mxu1 %v1439_v23  ;;  %v918_v47 = vld [vmem:[%s1744_s24 + $0x10] sm:$0xff] }
  0x3f   : > { %1351 = vmatprep.mubr.msk.bf16.mxu0 %vm605_vm0, %v583_v56  ;;  %1372 = vmatpush3.bf16.msra.mxu1 %v1439_v23  ;;  %p1444_p13 = pneg %p1443_p12 }
  0x40   : > { %v517_v62 = vmax.f32 %v492_v58, %v1254_v52  ;;  %v518_v63 = vmax.f32 %v493_v59, %v1255_v55  ;;  %1373 = vmatprep.subr.bf16.mxu1 %v1440_v24  ;;  %v919_v52 = vld [vmem:[%s1744_s24 + $0x18] sm:$0xff]  ;;  %v917_v58 = vld [vmem:[%s1744_s24 + $0x8] sm:$0xff] }
  0x42   : > { %v542_v3 = vmax.f32 %v517_v62, %v1270_v60  ;;  %v543_v4 = vmax.f32 %v518_v63, %v1271_v61 }
  0x43   : > { %1374 = vmatpush3.bf16.msra.mxu1 %v1440_v24 }
  0x44   : > { %v567_v7 = vmax.f32 %v542_v3, %v1286_v0  ;;  %v568_v8 = vmax.f32 %v543_v4, %v1287_v1  ;;  %v922_v0 = vld [vmem:[%s1744_s24 + $0x30] sm:$0xff]  ;;  %v920_v4 = vld [vmem:[%s1744_s24 + $0x20] sm:$0xff] }
  0x46   : > { %v575_v9 = vsub.f32 %v567_v7, %v351_v5  ;;  %v576_v10 = vsub.f32 %v568_v8, %v352_v6  ;;  %v923_v7 = vld [vmem:[%s1744_s24 + $0x38] sm:$0xff] }
  0x48   : > { %v584_v12 = vpack.c.bf16 %v576_v10, %v575_v9 }
  0x4a   : > { %1352 = vmatmul.mubr.msk.bf16.gmra.mrb[4].mxu0 %vm605_vm0, %v584_v12 }
  0x4b   : > { %1359 = vmatprep.mubr.msk.bf16.mxu0 %vm605_vm0, %v577_v11  ;;  %v921_v11 = vld [vmem:[%s1744_s24 + $0x28] sm:$0xff]  ;;  %s1445_s24 = sshll.u32 %s1505_s23, 4  ;;  %s1446_s24 = int_to_ptr.vmem [resolvable:$false] %s1445_s24 }
  0x4c   : > { %s1447_s25 = scalar_lea.vmem %s1446_s24, 2048  ;;  %p1448_p0 = scmp.lt.s32.totalorder %s1770_s12, %s1446_s24 }
  0x4d   : > { %p1449_p1 = scmp.lt.s32.totalorder %s1447_s25, %s1441_s22 }
  0x4f   : > { %p1450_p2 = por %p1449_p1, %p1448_p0 }
  0x51   : > { %p1451_p3 = pnand %p1450_p2, %p1444_p13 }
  0x52   : > { %1360 = vmatmul.mubr.msk.bf16.vlgmr.msra.gmra.mrb[0].mxu0 %vm605_vm0, %v578_v13 }
  0x53   : > { %1363 = vmatprep.mubr.msk.bf16.mxu0 %vm605_vm0, %v579_v14 }
  0x5a   : > { %1364 = vmatmul.mubr.msk.bf16.gmra.mrb[4].mxu0 %vm605_vm0, %v580_v15 }
 0x125   : > { %v1361_v54 = vpop.f32.mrb[0].mxu0 }
 0x126   : > { %v781_v16 = vadd.f32 %v1361_v54, %v1126_v53  ;;  %v741_v17 = vpop.f32.mrb[1].mxu0 }
 0x127   : > { %v779_v18 = vadd.f32 %v1126_v53, %v741_v17  ;;  %v1362_v19 = vpop.f32.mrb[2].mxu0 }
 0x128   : > { %v782_v20 = vadd.f32 %v1362_v19, %v1126_v53  ;;  %v744_v21 = vpop.f32.mrb[3].mxu0  ;;  %v789_v25 = vmax.f32 %v781_v16, 0.0 }
 0x129   : > { %v780_v22 = vadd.f32 %v1126_v53, %v744_v21  ;;  %v787_v27 = vmax.f32 %v779_v18, 0.0 }
 0x12a   : > { %v790_v26 = vmax.f32 %v782_v20, 0.0 }
 0x12b   : > { %v788_v28 = vmax.f32 %v780_v22, 0.0 }
 0x12c   : > { %v796_v29 = vpack.c.bf16 %v790_v26, %v789_v25 }
 0x12d   : > { %v1365_v30 = vpop.f32.mrb[4].mxu0  ;;  %v795_v31 = vpack.c.bf16 %v788_v28, %v787_v27 }
 0x12e   : > { %v785_v32 = vadd.f32 %v1365_v30, %v1126_v53  ;;  %v757_v33 = vpop.f32.mrb[5].mxu0 }
 0x12f   : > { %v783_v34 = vadd.f32 %v1126_v53, %v757_v33  ;;  %v1366_v35 = vpop.f32.mrb[6].mxu0  ;;  %1375 = vmatprep.mubr.msk.bf16.mxu1 %vm838_vm1, %v795_v31 }
 0x130   : > { %v786_v36 = vadd.f32 %v1366_v35, %v1126_v53  ;;  %v760_v38 = vpop.f32.mrb[7].mxu0  ;;  %1376 = vmatmul.mubr.msk.bf16.vlgmr.msra.gmra.mrb[0].mxu1 %vm838_vm1, %v796_v29  ;;  %v793_v40 = vmax.f32 %v785_v32, 0.0 }
 0x131   : > { %v784_v39 = vadd.f32 %v1126_v53, %v760_v38  ;;  %v791_v42 = vmax.f32 %v783_v34, 0.0 }
 0x132   : > { %v794_v41 = vmax.f32 %v786_v36, 0.0 }
 0x133   : > { %v792_v43 = vmax.f32 %v784_v39, 0.0 }
 0x134   : > { %v798_v37 = vpack.c.bf16 %v794_v41, %v793_v40 }
 0x135   : > { %v797_v44 = vpack.c.bf16 %v792_v43, %v791_v42 }
 0x137   : > { %1379 = vmatprep.mubr.msk.bf16.mxu1 %vm838_vm1, %v797_v44 }
 0x138   : > { %1380 = vmatmul.mubr.msk.bf16.gmra.mrb[4].mxu1 %vm838_vm1, %v798_v37 }
 0x203   : > { %v1377_v46 = vpop.f32.mrb[0].mxu1 }
 0x204   : > { %v894_v2 = vadd.f32 %v1377_v46, %v1127_v45  ;;  %v885_v48 = vpop.f32.mrb[1].mxu1 }
 0x205   : > { %v886_v50 = vadd.f32 %v1127_v45, %v885_v48  ;;  %v1378_v51 = vpop.f32.mrb[2].mxu1 }
 0x206   : > { %v926_v55 = vadd.f32 %v918_v47, %v894_v2  ;;  %v897_v56 = vadd.f32 %v1378_v51, %v1127_v45  ;;  %v888_v57 = vpop.f32.mrb[3].mxu1 }
 0x207   : > { %v924_v59 = vadd.f32 %v916_v49, %v886_v50  ;;  %v889_v60 = vadd.f32 %v1127_v45, %v888_v57 }
 0x208   : > { %934 = vst.msk [vmem:[%s328_s21 + $0x10] sm:$0xff] %vm605_vm0, %v926_v55  ;;  %v927_v61 = vadd.f32 %v919_v52, %v897_v56 }
 0x209   : > { %932 = vst.msk [vmem:[%s328_s21] sm:$0xff] %vm605_vm0, %v924_v59  ;;  %v925_v62 = vadd.f32 %v917_v58, %v889_v60 }
 0x20a   : > { %935 = vst.msk [vmem:[%s328_s21 + $0x18] sm:$0xff] %vm605_vm0, %v927_v61 }
 0x20b   : > { %933 = vst.msk [vmem:[%s328_s21 + $0x8] sm:$0xff] %vm605_vm0, %v925_v62  ;;  %v1381_v63 = vpop.f32.mrb[4].mxu1 }
 0x20c   : > { %v910_v1 = vadd.f32 %v1381_v63, %v1127_v45  ;;  %v901_v3 = vpop.f32.mrb[5].mxu1 }
 0x20d   : > { %v902_v5 = vadd.f32 %v1127_v45, %v901_v3  ;;  %v1382_v6 = vpop.f32.mrb[6].mxu1 }
 0x20e   : > { %v930_v8 = vadd.f32 %v922_v0, %v910_v1  ;;  %v913_v9 = vadd.f32 %v1382_v6, %v1127_v45  ;;  %v904_v10 = vpop.f32.mrb[7].mxu1 }
 0x20f   : > { %v928_v12 = vadd.f32 %v920_v4, %v902_v5  ;;  %v905_v13 = vadd.f32 %v1127_v45, %v904_v10 }
 0x210   : > { %938 = vst.msk [vmem:[%s328_s21 + $0x30] sm:$0xff] %vm605_vm0, %v930_v8  ;;  %v931_v14 = vadd.f32 %v923_v7, %v913_v9 }
 0x211   : > { %936 = vst.msk [vmem:[%s328_s21 + $0x20] sm:$0xff] %vm605_vm0, %v928_v12  ;;  %v929_v15 = vadd.f32 %v921_v11, %v905_v13 }
 0x212   : > { %939 = vst.msk [vmem:[%s328_s21 + $0x38] sm:$0xff] %vm605_vm0, %v931_v14 }
 0x213   : > { %937 = vst.msk [vmem:[%s328_s21 + $0x28] sm:$0xff] %vm605_vm0, %v929_v15 }
 0x214   : > { %1454 = shalt.err (!%p1451_p3)
}
 0x215   : > { %s1455_s20 = scalar_lea.hbm %s1768_s19, 1024  ;;  %s1459_s21 = scalar_lea.hbm %s1826_s8, 2048 }
 0x216   : > { %p1456_p4 = scmp.ne.s32.totalorder %s1768_s19, %s1455_s20  ;;  %p1460_p9 = scmp.lt.u32.totalorder %s1768_s19, %s1826_s8 }
 0x217   : > { %p1461_p10 = scmp.lt.u32.totalorder %s1459_s21, %s1455_s20  ;;  %p1463_p12 = scmp.lt.u32.totalorder %s1455_s20, %s1768_s19 }
 0x218   : > { %p1457_p7 = pnand %p1456_p4, %p1591_p5 }
 0x219   : > { %p1462_p11 = por %p1461_p10, %p1460_p9 }
 0x21a   : > { %p1458_p8 = pneg %p1457_p7 }
 0x21b   : > { %p1464_p13 = por %p1463_p12, %p1462_p11 }
 0x21d   : > { %p1465_p0 = pnand %p1464_p13, %p1458_p8 }
 0x21f   : > { %1468 = shalt.err (!%p1465_p0)
}
 0x220   : > { %s1506_s18 = smov 128   ;;  %s1507_s22 = smov 8  }
 0x221   : > { %1392 = dma.vmem_to_hbm [thread:$0]  (%p1591_p5), %s1770_s12, 1024, %s1768_s19, %s1777_s9, %s1506_s18, %s1506_s18, %s1507_s22  }
 0x222 PF: > { %p1398_p1 = scmp.ge.s32.totalorder %s1503_s30, 2  ;;  %s969_s23 = sand.u32 1, %s1491_s27  }
 0x223   : > { %s970_s24 = scalar_lea.sflag [#allocation3], %s969_s23 }
 0x224   : > { %p1395_p2 = pnand %p1398_p1, %p1595_p6 }
 0x226   : > { %1486 = dma.done.wait (!%p1395_p2), %s970_s24, 1024  }
 0x227   : > { %1488 = vsyncadd (!%p1395_p2), %s970_s24, 4294966272  ;;  %p18_p3 = scmp.ge.s32.totalorder %s1578_s11, 4   ;;  %s1829_s27 = smov %s1495_s28 }
 0x228   : > { %s1830_s28 = smov %s1499_s29  ;;  %s1831_s29 = smov %s1589_s14 }
 0x229   : > { %s1832_s30 = smov %s1578_s11  ;;  %20 = sbr.rel (!%p18_p3) target bundleno = 3 (0x3), region = 101 }
 0x230   :  { %975 = vsyncpa [#allocation3], 1 }
 0x231   :  { %977 = vsyncpa [#allocation3 + $0x1], 1 }

</bundles_post_ra>
